<compile_context>
chip_gen: v6e
topology: v6e:2x2x1
jax: 0.10.0
libtpu: 0.0.40
codegen_flags: <defaults>
</compile_context>

<pallas_src>
import jax
import jax.numpy as jnp
from jax.experimental import pallas as pl
from jax.experimental.pallas import tpu as pltpu

HIDDEN = 512


def _cdiv(a, b):
    return -(-a // b)


def _round_up(x, m):
    return _cdiv(x, m) * m


def _regressor_kernel(x_ref, w1_ref, b1_ref, w2r_ref, b2_ref, o_ref):
    # Layer 1 on the MXU: cast the f32 x tile to bf16 in-register (native MXU
    # dtype; a few VPU cycles per tile, avoids a separate XLA convert pass over
    # x in HBM) and accumulate in f32.
    x_bf = x_ref[...].astype(jnp.bfloat16)
    h = jnp.dot(x_bf, w1_ref[...], preferred_element_type=jnp.float32)
    h = jnp.maximum(h + b1_ref[...], 0.0)
    # Dropout(0.5): identity in eval mode.
    # TODO(synk): training-mode dropout (Bernoulli mask via
    #             pltpu.prng_random_bits + 2x scaling) not implemented.
    # Layer 2 (512 -> 1): f32 VPU multiply + lane reduction (see header note on
    # why this was kept over an MXU pass).
    y = jnp.sum(h * w2r_ref[...], axis=-1, keepdims=True) + b2_ref[0, 0]
    o_ref[...] = jax.nn.sigmoid(y).astype(o_ref.dtype)


def _pick_tile_b(B, F):
    """Batch tile: ~2 MiB of f32 x per tile (measured tile sweeps put >=512-row
    tiles at ~85% of HBM roofline; per-grid-step overhead is ~0.35 us), capped
    at 2048 rows so the f32 (tile_b, 512) layer-1 intermediates stay small in
    v7x's 64 MiB VMEM."""
    target_rows = (2 * 1024 * 1024) // max(4 * F, 1)
    tb = max(8, min(2048, target_rows))
    tb = (tb // 8) * 8          # f32 sublane alignment
    if tb >= B:
        return B                # single full-batch block (full dim always legal)
    return tb


def _vmem_limit_bytes(tile_b, F):
    """Generation-aware VMEM request derived from actual buffer sizes."""
    need = (
        F * HIDDEN * 2               # resident bf16 W1 (ideally single-buffered)
        + 2 * HIDDEN * 4             # b1 + w2 rows (f32)
        + 2 * tile_b * F * 4         # double-buffered f32 x tiles
        + 2 * tile_b * 4             # double-buffered output tiles
        + 3 * tile_b * HIDDEN * 4    # in-kernel f32 intermediates (h, h*w2, ...)
        + (2 << 20)                  # headroom for compiler scratch / semaphores
    )
    try:
        physical = pltpu.get_tpu_info().vmem_capacity_bytes  # 128 MiB v5e/v6e, 64 MiB v7x
    except Exception:
        physical = 64 * 1024 * 1024                           # conservative: v7x
    # Never ask for more than ~3/4 of physical VMEM (room for Mosaic scratch).
    # TODO(synk): once resident bf16 W1 + buffered x tiles exceed ~half of VMEM
    # (F >= ~24k-32k on v7x, ~2x that on v5e/v6e), add a K grid axis with an
    # f32 accumulator scratch instead of clamping here.
    return int(min(max(need, 32 * 1024 * 1024), physical * 3 // 4))


def _build_regressor_call(B, F, tile_b, n_tiles, single_buffer_weights):
    # Grid-invariant operands: index_map is constant, so a second pipeline
    # buffer is pure VMEM waste -> single-buffer them when supported.
    resident = {"pipeline_mode": pl.Buffered(1)} if single_buffer_weights else {}

    in_specs = [
        # x: streamed per (tile_b, F) tile, double-buffered by the pipeline.
        # If a profile ever shows the x DMA exposed, bump to pl.Buffered(3).
        pl.BlockSpec((tile_b, F), lambda i: (i, 0)),
        # W1 / b1 / w2 row: resident in VMEM across all grid steps.
        pl.BlockSpec((F, HIDDEN), lambda i: (0, 0), **resident),
        pl.BlockSpec((1, HIDDEN), lambda i: (0, 0), **resident),
        pl.BlockSpec((1, HIDDEN), lambda i: (0, 0), **resident),
        # b2 scalar in SMEM.
        pl.BlockSpec(memory_space=pltpu.MemorySpace.SMEM),
    ]

    cost = pl.CostEstimate(
        flops=2 * B * F * HIDDEN + 3 * B * HIDDEN,
        transcendentals=B,  # sigmoid
        bytes_accessed=(B * F * 4 + F * HIDDEN * 2 + 2 * HIDDEN * 4 + 4 + B * 4),
    )

    return pl.pallas_call(
        _regressor_kernel,
        out_shape=jax.ShapeDtypeStruct((B, 1), jnp.float32),
        grid=(n_tiles,),
        in_specs=in_specs,
        out_specs=pl.BlockSpec((tile_b, 1), lambda i: (i, 0)),
        compiler_params=pltpu.CompilerParams(
            dimension_semantics=("parallel",),   # shard batch tiles across v7x TCs
            vmem_limit_bytes=_vmem_limit_bytes(tile_b, F),
        ),
        cost_estimate=cost,
    )


def pytorch_regressor_forward(x, w1, b1, w2, b2, *, tile_b=None):
    """x: (B, F) f32; w1: (F, 512); b1: (1, 512); w2: (512, 1); b2: (1, 1)."""
    B, F = x.shape
    assert w1.shape == (F, HIDDEN)

    if tile_b is None:
        tile_b = _pick_tile_b(B, F)
    n_tiles = _cdiv(B, tile_b)
    # Megacore: ("parallel",) only helps with >= 2 grid steps. If a single tile
    # would cover a large batch, split it in two (~2x on v7x's 2 TensorCores;
    # the extra ~0.35 us step is noise at this size on 1-TC v5e/v6e).
    if n_tiles == 1 and B >= 1024:
        tile_b = _round_up(_cdiv(B, 2), 8)
        n_tiles = _cdiv(B, tile_b)

    # One-time weight prep: bf16 W1 halves its HBM fetch and VMEM residency.
    # F is deliberately NOT padded (no wrapper round-trip over x); a ragged K
    # only costs MXU utilization, which matters only once the kernel stops
    # being x-stream-bound (large F).
    w1_b = w1.astype(jnp.bfloat16)
    b1_r = jnp.asarray(b1, jnp.float32).reshape(1, HIDDEN)
    w2_r = jnp.asarray(w2, jnp.float32).reshape(1, HIDDEN)   # row layout for VPU path
    b2_s = jnp.asarray(b2, jnp.float32).reshape(1, 1)

    try:
        call = _build_regressor_call(B, F, tile_b, n_tiles, single_buffer_weights=True)
        return jax.block_until_ready(call(x, w1_b, b1_r, w2_r, b2_s))
    except Exception:
        # pipeline_mode=pl.Buffered is a newer Pallas feature; fall back to the
        # default double-buffered weights if this JAX/libtpu rejects it.
        call = _build_regressor_call(B, F, tile_b, n_tiles, single_buffer_weights=False)
        return call(x, w1_b, b1_r, w2_r, b2_s)


if __name__ == "__main__":
    key = jax.random.PRNGKey(0)
    B, F = 8, 32  # batch, in_features (small, consistent with nn.Linear(in_features, 512))
    k_x, k_w1, k_b1, k_w2, k_b2, k_x2 = jax.random.split(key, 6)

    x = jax.random.normal(k_x, (B, F), dtype=jnp.float32)

    # Deterministic parameter init (PyTorch-style uniform bounds).
    bound1 = 1.0 / (F ** 0.5)
    w1 = jax.random.uniform(k_w1, (F, HIDDEN), jnp.float32, -bound1, bound1)
    b1 = jax.random.uniform(k_b1, (1, HIDDEN), jnp.float32, -bound1, bound1)
    bound2 = 1.0 / (HIDDEN ** 0.5)
    w2 = jax.random.uniform(k_w2, (HIDDEN, 1), jnp.float32, -bound2, bound2)
    b2 = jax.random.uniform(k_b2, (1, 1), jnp.float32, -bound2, bound2)

    def reference(xv):
        # Pure-JAX f32 reference (eval-mode dropout = identity). bf16 layer-1
        # inputs in the kernel -> relaxed tolerance.
        return jax.nn.sigmoid(jnp.maximum(xv @ w1 + b1, 0.0) @ w2 + b2)

    # 1) Default single-tile path (tile_b == B).
    out = pytorch_regressor_forward(x, w1, b1, w2, b2)
    jax.block_until_ready(out)
    assert out.shape == (B, 1)
    assert jnp.allclose(out, reference(x), atol=2e-2, rtol=2e-2)

    # 2) Multi-tile streaming path with a ragged (masked) last block, as used
    #    for large batches in production: grid = (3,), blocks of 16 over B=40.
    B2 = 40
    x2 = jax.random.normal(k_x2, (B2, F), dtype=jnp.float32)
    out2 = pytorch_regressor_forward(x2, w1, b1, w2, b2, tile_b=16)
    jax.block_until_ready(out2)
    assert out2.shape == (B2, 1)
    assert jnp.allclose(out2, reference(x2), atol=2e-2, rtol=2e-2)

    print("KERNEL_OK")
</pallas_src>

<mosaic_0001>
module attributes {stable_mosaic.version = 11 : i64} {
  func.func @_regressor_kernel(%arg0: i32, %arg1: memref<8x32xf32, #tpu.memory_space<vmem>>, %arg2: memref<32x512xbf16, #tpu.memory_space<vmem>>, %arg3: memref<1x512xf32, #tpu.memory_space<vmem>>, %arg4: memref<1x512xf32, #tpu.memory_space<vmem>>, %arg5: memref<1x1xf32, #tpu.memory_space<smem>>, %arg6: memref<8x1xf32, #tpu.memory_space<vmem>>) attributes {dimension_semantics = [#tpu.dimension_semantics<parallel>], iteration_bounds = array<i64: 1>, scalar_prefetch = 0 : i64, scratch_operands = 0 : i64, tpu.core_type = #tpu.core_type<tc>, window_params = [{transform_indices = @transform_0, window_bounds = array<i64: 8, 32>}, {pipeline_mode = #tpu.pipeline_mode<synchronous>, transform_indices = @transform_1, window_bounds = array<i64: 32, 512>}, {pipeline_mode = #tpu.pipeline_mode<synchronous>, transform_indices = @transform_2, window_bounds = array<i64: 1, 512>}, {pipeline_mode = #tpu.pipeline_mode<synchronous>, transform_indices = @transform_3, window_bounds = array<i64: 1, 512>}, {transform_indices = @transform_4, window_bounds = array<i64: 1, 1>}, {transform_indices = @transform_5, window_bounds = array<i64: 8, 1>}]} {
    %c0 = arith.constant 0 : index
    %c0_0 = arith.constant 0 : index
    %0 = vector.load %arg1[%c0, %c0_0] : memref<8x32xf32, #tpu.memory_space<vmem>>, vector<8x32xf32>
    %1 = arith.truncf %0 : vector<8x32xf32> to vector<8x32xbf16>
    %c0_1 = arith.constant 0 : index
    %c0_2 = arith.constant 0 : index
    %2 = vector.load %arg2[%c0_1, %c0_2] : memref<32x512xbf16, #tpu.memory_space<vmem>>, vector<32x512xbf16>
    %cst = arith.constant dense<0.000000e+00> : vector<8x512xf32>
    %3 = tpu.matmul %1, %2, %cst {dimension_numbers = #tpu.dot_dimension_numbers<[1], [0], [0], [1], [0, 0, 1, 1], [], []>} : vector<8x32xbf16>, vector<32x512xbf16>, vector<8x512xf32> -> vector<8x512xf32>
    %c0_3 = arith.constant 0 : index
    %c0_4 = arith.constant 0 : index
    %4 = vector.load %arg3[%c0_3, %c0_4] : memref<1x512xf32, #tpu.memory_space<vmem>>, vector<1x512xf32>
    %5 = vector.broadcast %4 : vector<1x512xf32> to vector<8x512xf32>
    %6 = arith.addf %3, %5 : vector<8x512xf32>
    %cst_5 = arith.constant 0.000000e+00 : f32
    %7 = vector.broadcast %cst_5 : f32 to vector<8x512xf32>
    %8 = arith.maximumf %6, %7 : vector<8x512xf32>
    %c0_6 = arith.constant 0 : index
    %c0_7 = arith.constant 0 : index
    %9 = vector.load %arg4[%c0_6, %c0_7] : memref<1x512xf32, #tpu.memory_space<vmem>>, vector<1x512xf32>
    %10 = vector.broadcast %9 : vector<1x512xf32> to vector<8x512xf32>
    %11 = arith.mulf %8, %10 : vector<8x512xf32>
    %cst_8 = arith.constant dense<0.000000e+00> : vector<8xf32>
    %12 = vector.multi_reduction <add>, %11, %cst_8 [1] : vector<8x512xf32> to vector<8xf32>
    %13 = vector.shape_cast %12 : vector<8xf32> to vector<8x1xf32>
    %c0_9 = arith.constant 0 : index
    %c0_10 = arith.constant 0 : index
    %14 = memref.load %arg5[%c0_9, %c0_10] : memref<1x1xf32, #tpu.memory_space<smem>>
    %15 = vector.broadcast %14 : f32 to vector<8x1xf32>
    %16 = arith.addf %13, %15 : vector<8x1xf32>
    %17 = arith.negf %16 : vector<8x1xf32>
    %18 = math.exp %17 : vector<8x1xf32>
    %cst_11 = arith.constant 1.000000e+00 : f32
    %19 = vector.broadcast %cst_11 : f32 to vector<8x1xf32>
    %20 = arith.addf %19, %18 : vector<8x1xf32>
    %21 = arith.divf %19, %20 : vector<8x1xf32>
    %c0_12 = arith.constant 0 : index
    %c0_13 = arith.constant 0 : index
    %22 = vector.load %arg6[%c0_12, %c0_13] : memref<8x1xf32, #tpu.memory_space<vmem>>, vector<8x1xf32>
    tpu.vector_store %arg6[%c0_12, %c0_13], %21 {strides = array<i32>} : memref<8x1xf32, #tpu.memory_space<vmem>>, vector<8x1xf32>,
    return
  }
  func.func @transform_0(%arg0: i32) -> (i32, i32) {
    %c0_i32 = arith.constant 0 : i32
    %c0_i32_0 = arith.constant 0 : i32
    return %arg0, %c0_i32 : i32, i32
  }
  func.func @transform_1(%arg0: i32) -> (i32, i32) {
    %c0_i32 = arith.constant 0 : i32
    %c0_i32_0 = arith.constant 0 : i32
    %c0_i32_1 = arith.constant 0 : i32
    return %c0_i32, %c0_i32_0 : i32, i32
  }
  func.func @transform_2(%arg0: i32) -> (i32, i32) {
    %c0_i32 = arith.constant 0 : i32
    %c0_i32_0 = arith.constant 0 : i32
    %c0_i32_1 = arith.constant 0 : i32
    return %c0_i32, %c0_i32_0 : i32, i32
  }
  func.func @transform_3(%arg0: i32) -> (i32, i32) {
    %c0_i32 = arith.constant 0 : i32
    %c0_i32_0 = arith.constant 0 : i32
    %c0_i32_1 = arith.constant 0 : i32
    return %c0_i32, %c0_i32_0 : i32, i32
  }
  func.func @transform_4(%arg0: i32) -> (i32, i32) {
    %c0_i32 = arith.constant 0 : i32
    %c0_i32_0 = arith.constant 0 : i32
    %c0_i32_1 = arith.constant 0 : i32
    return %c0_i32, %c0_i32_0 : i32, i32
  }
  func.func @transform_5(%arg0: i32) -> (i32, i32) {
    %c0_i32 = arith.constant 0 : i32
    %c0_i32_0 = arith.constant 0 : i32
    return %arg0, %c0_i32 : i32, i32
  }
}

module attributes {stable_mosaic.version = 11 : i64} {
  func.func @_regressor_kernel(%arg0: i32, %arg1: memref<8x32xf32, #tpu.memory_space<vmem>>, %arg2: memref<32x512xbf16, #tpu.memory_space<vmem>>, %arg3: memref<1x512xf32, #tpu.memory_space<vmem>>, %arg4: memref<1x512xf32, #tpu.memory_space<vmem>>, %arg5: memref<1x1xf32, #tpu.memory_space<smem>>, %arg6: memref<8x1xf32, #tpu.memory_space<vmem>>) attributes {dimension_semantics = [#tpu.dimension_semantics<parallel>], iteration_bounds = array<i64: 1>, scalar_prefetch = 0 : i64, scratch_operands = 0 : i64, tpu.core_type = #tpu.core_type<tc>, window_params = [{transform_indices = @transform_0, window_bounds = array<i64: 8, 32>}, {pipeline_mode = #tpu.pipeline_mode<synchronous>, transform_indices = @transform_1, window_bounds = array<i64: 32, 512>}, {pipeline_mode = #tpu.pipeline_mode<synchronous>, transform_indices = @transform_2, window_bounds = array<i64: 1, 512>}, {pipeline_mode = #tpu.pipeline_mode<synchronous>, transform_indices = @transform_3, window_bounds = array<i64: 1, 512>}, {transform_indices = @transform_4, window_bounds = array<i64: 1, 1>}, {transform_indices = @transform_5, window_bounds = array<i64: 8, 1>}]} {
    %c0 = arith.constant 0 : index
    %c0_0 = arith.constant 0 : index
    %0 = vector.load %arg1[%c0, %c0_0] : memref<8x32xf32, #tpu.memory_space<vmem>>, vector<8x32xf32>
    %1 = arith.truncf %0 : vector<8x32xf32> to vector<8x32xbf16>
    %c0_1 = arith.constant 0 : index
    %c0_2 = arith.constant 0 : index
    %2 = vector.load %arg2[%c0_1, %c0_2] : memref<32x512xbf16, #tpu.memory_space<vmem>>, vector<32x512xbf16>
    %cst = arith.constant dense<0.000000e+00> : vector<8x512xf32>
    %3 = tpu.matmul %1, %2, %cst {dimension_numbers = #tpu.dot_dimension_numbers<[1], [0], [0], [1], [0, 0, 1, 1], [], []>} : vector<8x32xbf16>, vector<32x512xbf16>, vector<8x512xf32> -> vector<8x512xf32>
    %c0_3 = arith.constant 0 : index
    %c0_4 = arith.constant 0 : index
    %4 = vector.load %arg3[%c0_3, %c0_4] : memref<1x512xf32, #tpu.memory_space<vmem>>, vector<1x512xf32>
    %5 = vector.broadcast %4 : vector<1x512xf32> to vector<8x512xf32>
    %6 = arith.addf %3, %5 : vector<8x512xf32>
    %cst_5 = arith.constant 0.000000e+00 : f32
    %7 = vector.broadcast %cst_5 : f32 to vector<8x512xf32>
    %8 = arith.maximumf %6, %7 : vector<8x512xf32>
    %c0_6 = arith.constant 0 : index
    %c0_7 = arith.constant 0 : index
    %9 = vector.load %arg4[%c0_6, %c0_7] : memref<1x512xf32, #tpu.memory_space<vmem>>, vector<1x512xf32>
    %10 = vector.broadcast %9 : vector<1x512xf32> to vector<8x512xf32>
    %11 = arith.mulf %8, %10 : vector<8x512xf32>
    %cst_8 = arith.constant dense<0.000000e+00> : vector<8xf32>
    %12 = vector.multi_reduction <add>, %11, %cst_8 [1] : vector<8x512xf32> to vector<8xf32>
    %13 = vector.shape_cast %12 : vector<8xf32> to vector<8x1xf32>
    %c0_9 = arith.constant 0 : index
    %c0_10 = arith.constant 0 : index
    %14 = memref.load %arg5[%c0_9, %c0_10] : memref<1x1xf32, #tpu.memory_space<smem>>
    %15 = vector.broadcast %14 : f32 to vector<8x1xf32>
    %16 = arith.addf %13, %15 : vector<8x1xf32>
    %17 = arith.negf %16 : vector<8x1xf32>
    %18 = math.exp %17 : vector<8x1xf32>
    %cst_11 = arith.constant 1.000000e+00 : f32
    %19 = vector.broadcast %cst_11 : f32 to vector<8x1xf32>
    %20 = arith.addf %19, %18 : vector<8x1xf32>
    %21 = arith.divf %19, %20 : vector<8x1xf32>
    %c0_12 = arith.constant 0 : index
    %c0_13 = arith.constant 0 : index
    %22 = vector.load %arg6[%c0_12, %c0_13] : memref<8x1xf32, #tpu.memory_space<vmem>>, vector<8x1xf32>
    tpu.vector_store %arg6[%c0_12, %c0_13], %21 {strides = array<i32>} : memref<8x1xf32, #tpu.memory_space<vmem>>, vector<8x1xf32>,
    return
  }
  func.func @transform_0(%arg0: i32) -> (i32, i32) {
    %c0_i32 = arith.constant 0 : i32
    %c0_i32_0 = arith.constant 0 : i32
    return %arg0, %c0_i32 : i32, i32
  }
  func.func @transform_1(%arg0: i32) -> (i32, i32) {
    %c0_i32 = arith.constant 0 : i32
    %c0_i32_0 = arith.constant 0 : i32
    %c0_i32_1 = arith.constant 0 : i32
    return %c0_i32, %c0_i32_0 : i32, i32
  }
  func.func @transform_2(%arg0: i32) -> (i32, i32) {
    %c0_i32 = arith.constant 0 : i32
    %c0_i32_0 = arith.constant 0 : i32
    %c0_i32_1 = arith.constant 0 : i32
    return %c0_i32, %c0_i32_0 : i32, i32
  }
  func.func @transform_3(%arg0: i32) -> (i32, i32) {
    %c0_i32 = arith.constant 0 : i32
    %c0_i32_0 = arith.constant 0 : i32
    %c0_i32_1 = arith.constant 0 : i32
    return %c0_i32, %c0_i32_0 : i32, i32
  }
  func.func @transform_4(%arg0: i32) -> (i32, i32) {
    %c0_i32 = arith.constant 0 : i32
    %c0_i32_0 = arith.constant 0 : i32
    %c0_i32_1 = arith.constant 0 : i32
    return %c0_i32, %c0_i32_0 : i32, i32
  }
  func.func @transform_5(%arg0: i32) -> (i32, i32) {
    %c0_i32 = arith.constant 0 : i32
    %c0_i32_0 = arith.constant 0 : i32
    return %arg0, %c0_i32 : i32, i32
  }
}

</mosaic_0001>

<bundles_post_ra>
// kernel: tpu_custom_call.1
= control target key start
LH: loop header
LB: loop body
LE: loop exit
PB: predicated region body
PF: predicated region fallthrough
CT: control target
= control target key end

     0   :  { %11 = vsyncpa [#allocation4], 0  ;;  %s420_s0 = inlined_call_operand.hbm [shape: f32[8,32], index: 0, kind: input, shape index: {}]   ;;  %s421_s1 = inlined_call_operand.hbm [shape: bf16[32,512], index: 1, kind: input, shape index: {}]   ;;  %s422_s2 = inlined_call_operand.vmem [shape: f32[1,512], index: 2, kind: input, shape index: {}]   ;;  %s423_s3 = inlined_call_operand.hbm [shape: f32[1,512], index: 3, kind: input, shape index: {}]   ;;  %s424_s4 = inlined_call_operand.<no memory space> [shape: f32[1,1], index: 4, kind: input, shape index: {}]   ;;  %s425_s5 = inlined_call_operand.vmem [shape: f32[8,1], index: 5, kind: output, shape index: {}]  }
   0x1   :  { %12 = vsyncpa [#allocation6], 0  ;;  %s366_s18 = smov [#allocation5]  }
   0x2   :  { %s28_s19 = sshll.u32 %s366_s18, 4  ;;  %s29_s19 = int_to_ptr.vmem [resolvable:$true] %s28_s19 }
   0x3   :  { %s310_s20 = scalar_lea.vmem %s29_s19, 1024  ;;  %p315_p1 = scmp.lt.s32.totalorder %s29_s19, %s29_s19 }
   0x4   :  { %p311_p0 = scmp.ne.s32.totalorder %s29_s19, %s310_s20  ;;  %p316_p2 = scmp.lt.s32.totalorder %s310_s20, %s310_s20 }
   0x6   :  { %p317_p3 = por %p316_p2, %p315_p1 }
   0x8   :  { %p318_p4 = pnand %p317_p3, %p311_p0 }
   0xa   :  { %321 = shalt.err (!%p318_p4)
}
   0xb   :  { %s367_s21 = smov 256   ;;  %s368_s22 = smov 16  }
   0xc   :  { %34 = dma.hbm_to_vmem [thread:$0]  %s421_s1, 1024, %s29_s19, [#allocation6], %s367_s21, %s367_s21, %s368_s22  }
   0xd   :  { %s369_s25 = smov [#allocation3]   ;;  %s370_s27 = smov [#allocation7]  }
   0xe   :  { %s19_s26 = sshll.u32 %s369_s25, 4  ;;  %s43_s28 = sshll.u32 %s370_s27, 4  ;;  %s20_s26 = int_to_ptr.vmem [resolvable:$true] %s19_s26  ;;  %s44_s28 = int_to_ptr.vmem [resolvable:$true] %s43_s28 }
   0xf   :  { %s330_s29 = scalar_lea.vmem %s20_s26, 128  ;;  %p335_p6 = scmp.lt.s32.totalorder %s20_s26, %s20_s26 }
  0x10   :  { %p331_p5 = scmp.ne.s32.totalorder %s20_s26, %s330_s29  ;;  %p336_p7 = scmp.lt.s32.totalorder %s330_s29, %s330_s29 }
  0x12   :  { %p337_p8 = por %p336_p7, %p335_p6 }
  0x14   :  { %p338_p9 = pnand %p337_p8, %p331_p5 }
  0x16   :  { %341 = shalt.err (!%p338_p9)
}
  0x17   :  { %22 = dma.hbm_to_vmem [thread:$0]  %s420_s0, 128, %s20_s26, [#allocation4]  }
  0x18   :  { %s350_s7 = scalar_lea.vmem %s44_s28, 64  ;;  %p355_p11 = scmp.lt.s32.totalorder %s44_s28, %s44_s28 }
  0x19   :  { %p351_p10 = scmp.ne.s32.totalorder %s44_s28, %s350_s7  ;;  %p356_p12 = scmp.lt.s32.totalorder %s350_s7, %s350_s7 }
  0x1b   :  { %p357_p13 = por %p356_p12, %p355_p11 }
  0x1d   :  { %p358_p0 = pnand %p357_p13, %p351_p10 }
  0x1f   :  { %361 = shalt.err (!%p358_p0)
}
  0x20   :  { %46 = dma.hbm_to_vmem [thread:$0]  %s423_s3, 64, %s44_s28, [#allocation6]  }
  0x21   :  { %362 = dma.done.wait [#allocation4], 128  }
  0x22   :  { %363 = vsyncadd [#allocation4], 4294967168 }
  0x23   :  { %364 = dma.done.wait [#allocation6], 1088  }
  0x24   :  { %365 = vsyncadd [#allocation6], 4294966208  ;;  %v371_v0 = vmov 0   ;;  %v286_v1 = vld [vmem:[#allocation5 + $0x24] ss:$16 sps:$4 sm:$0xff]   ;;  %v59_v9 = vld [vmem:[#allocation3] sm:$0xff]  ;;  %v71_v11 = vlaneseq  ;;  %v253_v50 = vstv %s424_s4 }
  0x25   :  { %167 = vmatprep.mubr.bf16.mxu0 %v371_v0  ;;  %208 = vmatprep.mubr.bf16.mxu1 %v371_v0  ;;  %v288_v2 = vld [vmem:[#allocation5 + $0x2c] ss:$16 sps:$4 sm:$0xff]   ;;  %v290_v3 = vld [vmem:[#allocation5 + $0x20] ss:$16 sps:$4 sm:$0xff]   ;;  %v291_v4 = vld [vmem:[#allocation5 + $0x28] ss:$16 sps:$4 sm:$0xff]   ;;  %v60_v10 = vpack.c.bf16 %v59_v9, %v59_v9 }
  0x26   :  { %147 = vmatprep.subr.bf16.mxu0 %v286_v1  ;;  %188 = vmatprep.subr.bf16.mxu1 %v288_v2  ;;  %v292_v5 = vld [vmem:[#allocation5 + $0x4] ss:$16 sps:$4 sm:$0xff]   ;;  %v294_v6 = vld [vmem:[#allocation5 + $0xc] ss:$16 sps:$4 sm:$0xff]   ;;  %v296_v7 = vld [vmem:[#allocation5] ss:$16 sps:$4 sm:$0xff]  }
  0x27   :  { %148 = vmatpush1.bf16.msra.mxu0 %v290_v3  ;;  %189 = vmatpush1.bf16.msra.mxu1 %v291_v4  ;;  %v297_v8 = vld [vmem:[#allocation5 + $0x8] ss:$16 sps:$4 sm:$0xff]   ;;  %vm131_vm0 = vcmask 261120   ;;  %v72_v12 = vshrl.u32 %v71_v11, 7  ;;  %v221_v20 = vld [vmem:[#allocation7] sm:$0xf] }
  0x28   :  { %149 = vmatprep.subr.bf16.mxu0 %v292_v5  ;;  %190 = vmatprep.subr.bf16.mxu1 %v294_v6  ;;  %v69_v15 = vld [vmem:[%s422_s2] sm:$0xf]  ;;  %vm261_vm1 = vcmask 7168  }
  0x29   :  { %v73_v13 = vsub.s32 0, %v72_v12  ;;  %v81_v14 = vsub.s32 2, %v72_v12  ;;  %v77_v16 = vsub.s32 1, %v72_v12  ;;  %v85_v17 = vsub.s32 3, %v72_v12 }
  0x2b   :  { %150 = vmatpush1.bf16.msra.mxu0 %v296_v7  ;;  %191 = vmatpush1.bf16.msra.mxu1 %v297_v8  ;;  %v74_v18 = vrot.slane %v69_v15, %v73_v13  ;;  %v82_v19 = vrot.slane %v69_v15, %v81_v14  ;;  %v78_v21 = vrot.slane %v69_v15, %v77_v16 }
  0x2c   :  { %v86_v22 = vrot.slane %v69_v15, %v85_v17  ;;  %v226_v27 = vrot.slane %v221_v20, %v73_v13  ;;  %v234_v28 = vrot.slane %v221_v20, %v81_v14  ;;  %v230_v30 = vrot.slane %v221_v20, %v77_v16 }
  0x2d   :  { %v238_v41 = vrot.slane %v221_v20, %v85_v17 }
  0x2e   :  { %277 = vmatmul.mubr.msk.bf16.vlgmr.msra.gmra.mxu0 %vm131_vm0, %v60_v10  ;;  %278 = vmatmul.mubr.msk.bf16.vlgmr.msra.gmra.mxu1 %vm131_vm0, %v60_v10 }
  0xee   :  { %v169_v23 = vpop.f32.mrf.mxu0  ;;  %v210_v24 = vpop.f32.mrf.mxu1 }
  0xef   :  { %v170_v25 = vadd.f32 %v169_v23, %v74_v18  ;;  %v211_v26 = vadd.f32 %v210_v24, %v82_v19 }
  0xf0   :  { %v171_v29 = vpop.f32.mrf.mxu0  ;;  %v212_v31 = vpop.f32.mrf.mxu1 }
  0xf1   :  { %v217_v32 = vmax.f32 %v170_v25, 0.0  ;;  %v219_v33 = vmax.f32 %v211_v26, 0.0  ;;  %v172_v34 = vadd.f32 %v171_v29, %v78_v21  ;;  %v213_v35 = vadd.f32 %v212_v31, %v86_v22 }
  0xf2   :  { %v173_v36 = vpop.f32.mrf.mxu0  ;;  %v214_v37 = vpop.f32.mrf.mxu1 }
  0xf3   :  { %v218_v38 = vmax.f32 %v172_v34, 0.0  ;;  %v243_v42 = vmul.f32 %v226_v27, %v217_v32  ;;  %v245_v43 = vmul.f32 %v234_v28, %v219_v33  ;;  %v220_v45 = vmax.f32 %v213_v35, 0.0 }
  0xf4   :  { %v174_v39 = vpop.f32.mrf.mxu0  ;;  %v215_v40 = vpop.f32.mrf.mxu1 }
  0xf5   :  { %v244_v44 = vmul.f32 %v230_v30, %v218_v38  ;;  %v246_v47 = vmul.f32 %v238_v41, %v220_v45 }
  0xf7   :  { %v247_v46 = vadd.f32 %v244_v44, %v243_v42 }
  0xf9   :  { %v248_v48 = vadd.f32 %v247_v46, %v245_v43 }
  0xfb   :  { %v249_v49 = vadd.f32 %v248_v48, %v246_v47 }
  0xfd   :  { %250 = vadd.xlane.f32.xlu0 %v249_v49 }
 0x186   :  { %v251_v51 = vpop.xlane.xlu0 %250 }
 0x187   :  { %v254_v52 = vadd.f32 %v253_v50, %v251_v51 }
 0x189   :  { %v279_v53 = vmul.f32 -1.442695, %v254_v52 }
 0x18b   :  { %298 = vpow2.f32 %v279_v53 }
 0x198   :  { %v299_v54 = vpop.eup %298 }
 0x199   :  { %v258_v55 = vadd.f32 1.0, %v299_v54 }
 0x19b   :  { %300 = vrcp.f32 %v258_v55 }
 0x1a8   :  { %v301_v56 = vpop.eup %300 }
 0x1a9   :  { %262 = vst.msk [vmem:[%s425_s5] sm:$0xff] %vm261_vm1, %v301_v56 }
 0x1aa   :  { %267 = vsyncpa [#allocation4], 1 }
 0x1ab   :  { %268 = vsyncpa [#allocation6], 1 }

// kernel: tpu_custom_call.1
= control target key start
LH: loop header
LB: loop body
LE: loop exit
PB: predicated region body
PF: predicated region fallthrough
CT: control target
= control target key end

     0   :  { %11 = vsyncpa [#allocation4], 0  ;;  %s420_s0 = inlined_call_operand.hbm [shape: f32[8,32], index: 0, kind: input, shape index: {}]   ;;  %s421_s1 = inlined_call_operand.hbm [shape: bf16[32,512], index: 1, kind: input, shape index: {}]   ;;  %s422_s2 = inlined_call_operand.vmem [shape: f32[1,512], index: 2, kind: input, shape index: {}]   ;;  %s423_s3 = inlined_call_operand.hbm [shape: f32[1,512], index: 3, kind: input, shape index: {}]   ;;  %s424_s4 = inlined_call_operand.<no memory space> [shape: f32[1,1], index: 4, kind: input, shape index: {}]   ;;  %s425_s5 = inlined_call_operand.vmem [shape: f32[8,1], index: 5, kind: output, shape index: {}]  }
   0x1   :  { %12 = vsyncpa [#allocation6], 0  ;;  %s366_s18 = smov [#allocation5]  }
   0x2   :  { %s28_s19 = sshll.u32 %s366_s18, 4  ;;  %s29_s19 = int_to_ptr.vmem [resolvable:$true] %s28_s19 }
   0x3   :  { %s310_s20 = scalar_lea.vmem %s29_s19, 1024  ;;  %p315_p1 = scmp.lt.s32.totalorder %s29_s19, %s29_s19 }
   0x4   :  { %p311_p0 = scmp.ne.s32.totalorder %s29_s19, %s310_s20  ;;  %p316_p2 = scmp.lt.s32.totalorder %s310_s20, %s310_s20 }
   0x6   :  { %p317_p3 = por %p316_p2, %p315_p1 }
   0x8   :  { %p318_p4 = pnand %p317_p3, %p311_p0 }
   0xa   :  { %321 = shalt.err (!%p318_p4)
}
   0xb   :  { %s367_s21 = smov 256   ;;  %s368_s22 = smov 16  }
   0xc   :  { %34 = dma.hbm_to_vmem [thread:$0]  %s421_s1, 1024, %s29_s19, [#allocation6], %s367_s21, %s367_s21, %s368_s22  }
   0xd   :  { %s369_s25 = smov [#allocation3]   ;;  %s370_s27 = smov [#allocation7]  }
   0xe   :  { %s19_s26 = sshll.u32 %s369_s25, 4  ;;  %s43_s28 = sshll.u32 %s370_s27, 4  ;;  %s20_s26 = int_to_ptr.vmem [resolvable:$true] %s19_s26  ;;  %s44_s28 = int_to_ptr.vmem [resolvable:$true] %s43_s28 }
   0xf   :  { %s330_s29 = scalar_lea.vmem %s20_s26, 128  ;;  %p335_p6 = scmp.lt.s32.totalorder %s20_s26, %s20_s26 }
  0x10   :  { %p331_p5 = scmp.ne.s32.totalorder %s20_s26, %s330_s29  ;;  %p336_p7 = scmp.lt.s32.totalorder %s330_s29, %s330_s29 }
  0x12   :  { %p337_p8 = por %p336_p7, %p335_p6 }
  0x14   :  { %p338_p9 = pnand %p337_p8, %p331_p5 }
  0x16   :  { %341 = shalt.err (!%p338_p9)
}
  0x17   :  { %22 = dma.hbm_to_vmem [thread:$0]  %s420_s0, 128, %s20_s26, [#allocation4]  }
  0x18   :  { %s350_s7 = scalar_lea.vmem %s44_s28, 64  ;;  %p355_p11 = scmp.lt.s32.totalorder %s44_s28, %s44_s28 }
  0x19   :  { %p351_p10 = scmp.ne.s32.totalorder %s44_s28, %s350_s7  ;;  %p356_p12 = scmp.lt.s32.totalorder %s350_s7, %s350_s7 }
  0x1b   :  { %p357_p13 = por %p356_p12, %p355_p11 }
  0x1d   :  { %p358_p0 = pnand %p357_p13, %p351_p10 }
  0x1f   :  { %361 = shalt.err (!%p358_p0)
}
  0x20   :  { %46 = dma.hbm_to_vmem [thread:$0]  %s423_s3, 64, %s44_s28, [#allocation6]  }
  0x21   :  { %362 = dma.done.wait [#allocation4], 128  }
  0x22   :  { %363 = vsyncadd [#allocation4], 4294967168 }
  0x23   :  { %364 = dma.done.wait [#allocation6], 1088  }
  0x24   :  { %365 = vsyncadd [#allocation6], 4294966208  ;;  %v371_v0 = vmov 0   ;;  %v286_v1 = vld [vmem:[#allocation5 + $0x24] ss:$16 sps:$4 sm:$0xff]   ;;  %v59_v9 = vld [vmem:[#allocation3] sm:$0xff]  ;;  %v71_v11 = vlaneseq  ;;  %v253_v50 = vstv %s424_s4 }
  0x25   :  { %167 = vmatprep.mubr.bf16.mxu0 %v371_v0  ;;  %208 = vmatprep.mubr.bf16.mxu1 %v371_v0  ;;  %v288_v2 = vld [vmem:[#allocation5 + $0x2c] ss:$16 sps:$4 sm:$0xff]   ;;  %v290_v3 = vld [vmem:[#allocation5 + $0x20] ss:$16 sps:$4 sm:$0xff]   ;;  %v291_v4 = vld [vmem:[#allocation5 + $0x28] ss:$16 sps:$4 sm:$0xff]   ;;  %v60_v10 = vpack.c.bf16 %v59_v9, %v59_v9 }
  0x26   :  { %147 = vmatprep.subr.bf16.mxu0 %v286_v1  ;;  %188 = vmatprep.subr.bf16.mxu1 %v288_v2  ;;  %v292_v5 = vld [vmem:[#allocation5 + $0x4] ss:$16 sps:$4 sm:$0xff]   ;;  %v294_v6 = vld [vmem:[#allocation5 + $0xc] ss:$16 sps:$4 sm:$0xff]   ;;  %v296_v7 = vld [vmem:[#allocation5] ss:$16 sps:$4 sm:$0xff]  }
  0x27   :  { %148 = vmatpush1.bf16.msra.mxu0 %v290_v3  ;;  %189 = vmatpush1.bf16.msra.mxu1 %v291_v4  ;;  %v297_v8 = vld [vmem:[#allocation5 + $0x8] ss:$16 sps:$4 sm:$0xff]   ;;  %vm131_vm0 = vcmask 261120   ;;  %v72_v12 = vshrl.u32 %v71_v11, 7  ;;  %v221_v20 = vld [vmem:[#allocation7] sm:$0xf] }
  0x28   :  { %149 = vmatprep.subr.bf16.mxu0 %v292_v5  ;;  %190 = vmatprep.subr.bf16.mxu1 %v294_v6  ;;  %v69_v15 = vld [vmem:[%s422_s2] sm:$0xf]  ;;  %vm261_vm1 = vcmask 7168  }
  0x29   :  { %v73_v13 = vsub.s32 0, %v72_v12  ;;  %v81_v14 = vsub.s32 2, %v72_v12  ;;  %v77_v16 = vsub.s32 1, %v72_v12  ;;  %v85_v17 = vsub.s32 3, %v72_v12 }
  0x2b   :  { %150 = vmatpush1.bf16.msra.mxu0 %v296_v7  ;;  %191 = vmatpush1.bf16.msra.mxu1 %v297_v8  ;;  %v74_v18 = vrot.slane %v69_v15, %v73_v13  ;;  %v82_v19 = vrot.slane %v69_v15, %v81_v14  ;;  %v78_v21 = vrot.slane %v69_v15, %v77_v16 }
  0x2c   :  { %v86_v22 = vrot.slane %v69_v15, %v85_v17  ;;  %v226_v27 = vrot.slane %v221_v20, %v73_v13  ;;  %v234_v28 = vrot.slane %v221_v20, %v81_v14  ;;  %v230_v30 = vrot.slane %v221_v20, %v77_v16 }
  0x2d   :  { %v238_v41 = vrot.slane %v221_v20, %v85_v17 }
  0x2e   :  { %277 = vmatmul.mubr.msk.bf16.vlgmr.msra.gmra.mxu0 %vm131_vm0, %v60_v10  ;;  %278 = vmatmul.mubr.msk.bf16.vlgmr.msra.gmra.mxu1 %vm131_vm0, %v60_v10 }
  0xee   :  { %v169_v23 = vpop.f32.mrf.mxu0  ;;  %v210_v24 = vpop.f32.mrf.mxu1 }
  0xef   :  { %v170_v25 = vadd.f32 %v169_v23, %v74_v18  ;;  %v211_v26 = vadd.f32 %v210_v24, %v82_v19 }
  0xf0   :  { %v171_v29 = vpop.f32.mrf.mxu0  ;;  %v212_v31 = vpop.f32.mrf.mxu1 }
  0xf1   :  { %v217_v32 = vmax.f32 %v170_v25, 0.0  ;;  %v219_v33 = vmax.f32 %v211_v26, 0.0  ;;  %v172_v34 = vadd.f32 %v171_v29, %v78_v21  ;;  %v213_v35 = vadd.f32 %v212_v31, %v86_v22 }
  0xf2   :  { %v173_v36 = vpop.f32.mrf.mxu0  ;;  %v214_v37 = vpop.f32.mrf.mxu1 }
  0xf3   :  { %v218_v38 = vmax.f32 %v172_v34, 0.0  ;;  %v243_v42 = vmul.f32 %v226_v27, %v217_v32  ;;  %v245_v43 = vmul.f32 %v234_v28, %v219_v33  ;;  %v220_v45 = vmax.f32 %v213_v35, 0.0 }
  0xf4   :  { %v174_v39 = vpop.f32.mrf.mxu0  ;;  %v215_v40 = vpop.f32.mrf.mxu1 }
  0xf5   :  { %v244_v44 = vmul.f32 %v230_v30, %v218_v38  ;;  %v246_v47 = vmul.f32 %v238_v41, %v220_v45 }
  0xf7   :  { %v247_v46 = vadd.f32 %v244_v44, %v243_v42 }
  0xf9   :  { %v248_v48 = vadd.f32 %v247_v46, %v245_v43 }
  0xfb   :  { %v249_v49 = vadd.f32 %v248_v48, %v246_v47 }
  0xfd   :  { %250 = vadd.xlane.f32.xlu0 %v249_v49 }
 0x186   :  { %v251_v51 = vpop.xlane.xlu0 %250 }
 0x187   :  { %v254_v52 = vadd.f32 %v253_v50, %v251_v51 }
 0x189   :  { %v279_v53 = vmul.f32 -1.442695, %v254_v52 }
 0x18b   :  { %298 = vpow2.f32 %v279_v53 }
 0x198   :  { %v299_v54 = vpop.eup %298 }
 0x199   :  { %v258_v55 = vadd.f32 1.0, %v299_v54 }
 0x19b   :  { %300 = vrcp.f32 %v258_v55 }
 0x1a8   :  { %v301_v56 = vpop.eup %300 }
 0x1a9   :  { %262 = vst.msk [vmem:[%s425_s5] sm:$0xff] %vm261_vm1, %v301_v56 }
 0x1aa   :  { %267 = vsyncpa [#allocation4], 1 }
 0x1ab   :  { %268 = vsyncpa [#allocation6], 1 }

</bundles_post_ra>
